<compile_context>
chip_gen: v6e
topology: v6e:2x2x1
jax: 0.10.0
libtpu: 0.0.40
codegen_flags: <defaults>
</compile_context>

<pallas_src>
import jax
import jax.numpy as jnp
from jax.experimental import pallas as pl
from jax.experimental.pallas import tpu as pltpu


def _attention_body(x, w_row, mask):
    """x: (TB, S, D) native dtype; w_row: (1, D); mask: (TB, S) f32 or None."""
    # tanh in the input dtype (bf16 EUP path on v6e/v7x; compiler upcasts on v5e).
    t = jnp.tanh(x)
    w = w_row.astype(jnp.float32)                                          # (1, D)
    # logits[b, s] = sum_d tanh(x)[b, s, d] * w[d]
    # alpha_net bias omitted: softmax is shift-invariant, so it is a no-op.
    # TODO(synk): if bundle dumps show XLU saturation from this lane reduce,
    # move it to the (idle) MXU as a (TB*S, D) x (D, 1) matmul.
    logits = jnp.sum(t.astype(jnp.float32) * w[None, :, :], axis=-1)       # (TB, S)

    m = jnp.max(logits, axis=-1, keepdims=True)                            # (TB, 1)
    e = jnp.exp(logits - m)                                                # (TB, S)
    if mask is not None:
        # softmax -> mask -> renormalize  ==  (exp * mask) / sum  for 0/1 masks,
        # including the reference's 0/0 behavior on fully masked rows.
        e = e * mask
    p = e / jnp.sum(e, axis=-1, keepdims=True)                             # (TB, S)

    # Weighted feature sum on the MXU, streaming feats in their native dtype
    # (no full-size f32 copy of the feats block is materialized).
    out = jnp.einsum(
        "bqs,bsd->bqd",
        p[:, None, :].astype(x.dtype),
        x,
        preferred_element_type=jnp.float32,
    )[:, 0, :]                                                             # (TB, D)
    return out


def _attention_kernel(feats_ref, w_ref, out_ref):
    # feats_ref: (TB, S, D), w_ref: (1, D), out_ref: (TB, D)
    out = _attention_body(feats_ref[...], w_ref[...], None)
    out_ref[...] = out.astype(out_ref.dtype)


def _attention_kernel_masked(feats_ref, mask_ref, w_ref, out_ref):
    # mask_ref: (TB, S) in the feats dtype, 0/1 valued
    mask = mask_ref[...].astype(jnp.float32)
    out = _attention_body(feats_ref[...], w_ref[...], mask)
    out_ref[...] = out.astype(out_ref.dtype)


def _pick_block_batch(B, S, D, itemsize):
    """Batch rows per grid step: ~2 MiB feats blocks (HBM streaming saturates
    at 1-4 MiB tiles), sublane-aligned for the dtype, and >= 8 grid steps when
    the batch allows so both v7x TensorCores get pipelined work."""
    sublane = {4: 8, 2: 16, 1: 32}.get(int(itemsize), 8)
    bytes_per_row = max(1, S * D * int(itemsize))
    tb = max(1, (2 * 1024 * 1024) // bytes_per_row)        # ~2 MiB of feats / step
    if B >= 8 * sublane:                                   # >= 8 steps (>= 4 per TC)
        tb = min(tb, max(sublane, (B // 8 // sublane) * sublane))
    elif B >= 2 * sublane:                                 # at least 2 steps
        tb = min(tb, max(sublane, (B // 2 // sublane) * sublane))
    tb = min(tb, B)
    if tb < B:
        # Sublane-aligned batch blocks (second-to-last dim of the (TB, D)
        # output block must be a multiple of the packed sublane count unless
        # it equals the full batch).
        tb = min(B, max(sublane, (tb // sublane) * sublane))
    return int(tb)


def attention_forward(att_feats, alpha_weight, alpha_bias=None, att_masks=None):
    """att_feats: (B, ..., D) (middle dims flatten to att_size S, matching the
    PyTorch `numel // B // D` logic); alpha_weight: (1, D) torch Linear layout;
    alpha_bias is accepted for API parity but unused (softmax shift-invariance
    makes it a no-op); att_masks: optional, reshapeable to (B, S), 0/1 valued."""
    del alpha_bias  # no-op under the softmax
    B = att_feats.shape[0]
    D = att_feats.shape[-1]
    S = att_feats.size // B // D
    feats = att_feats.reshape(B, S, D)
    w = alpha_weight.reshape(1, D)                         # lane-dense weight row

    itemsize = jnp.dtype(feats.dtype).itemsize
    tb = _pick_block_batch(B, S, D, itemsize)
    grid = (pl.cdiv(B, tb),)

    feats_spec = pl.BlockSpec((tb, S, D), lambda i: (i, 0, 0))
    w_spec = pl.BlockSpec((1, D), lambda i: (0, 0))
    out_spec = pl.BlockSpec((tb, D), lambda i: (i, 0))

    cparams = pltpu.CompilerParams(
        dimension_semantics=("parallel",),
        vmem_limit_bytes=32 * 1024 * 1024,
    )
    out_shape = jax.ShapeDtypeStruct((B, D), feats.dtype)

    # TODO(synk): if production rnn_size (D) is < 128 / not a multiple of 128,
    # a lane-dense repack of the output would further reduce masked stores.
    if att_masks is None:
        return pl.pallas_call(
            _attention_kernel,
            out_shape=out_shape,
            grid=grid,
            in_specs=[feats_spec, w_spec],
            out_specs=out_spec,
            compiler_params=cparams,
        )(feats, w)

    # Stream the mask in the feats dtype (bf16 halves its HBM bytes; 0/1 exact).
    mask = att_masks.reshape(B, S).astype(feats.dtype)
    mask_spec = pl.BlockSpec((tb, S), lambda i: (i, 0))
    return pl.pallas_call(
        _attention_kernel_masked,
        out_shape=out_shape,
        grid=grid,
        in_specs=[feats_spec, mask_spec, w_spec],
        out_specs=out_spec,
        compiler_params=cparams,
    )(feats, mask, w)


def _reference(att_feats, alpha_weight, alpha_bias, att_masks=None):
    B, S, D = att_feats.shape
    dot = jnp.tanh(att_feats).reshape(-1, D) @ alpha_weight.T + alpha_bias  # (B*S, 1)
    weight = jax.nn.softmax(dot.reshape(B, S), axis=1)
    if att_masks is not None:
        weight = weight * att_masks.reshape(B, S).astype(jnp.float32)
        weight = weight / jnp.sum(weight, axis=1, keepdims=True)
    return jnp.einsum("bs,bsd->bd", weight, att_feats)


if __name__ == "__main__":
    key = jax.random.PRNGKey(0)
    k1, k2, k3, k4, k5 = jax.random.split(key, 5)

    # Case 1: small shapes consistent with the module (batch=2, att_size=8, rnn_size=32).
    B, S, D = 2, 8, 32
    att_feats = jax.random.normal(k1, (B, S, D), dtype=jnp.float32)
    # "Linear(rnn_size, 1)" params (torch layout: weight (1, D), bias (1,)).
    alpha_weight = jax.random.normal(k2, (1, D), dtype=jnp.float32) * 0.1
    alpha_bias = jax.random.normal(k3, (1,), dtype=jnp.float32) * 0.1
    # Binary mask: first 6 positions valid, last 2 masked out.
    att_masks = jnp.concatenate(
        [jnp.ones((B, 6), jnp.float32), jnp.zeros((B, 2), jnp.float32)], axis=1
    )

    out_masked = attention_forward(att_feats, alpha_weight, alpha_bias, att_masks)
    out_nomask = attention_forward(att_feats, alpha_weight, alpha_bias, None)

    # Case 2: larger batch to exercise multi-step batch tiling (grid > 1).
    B2 = 32
    feats2 = jax.random.normal(k4, (B2, S, D), dtype=jnp.float32)
    mask2 = (jax.random.uniform(k5, (B2, S)) > 0.3).astype(jnp.float32)
    mask2 = mask2.at[:, 0].set(1.0)  # keep >= 1 valid position per row
    out2 = attention_forward(feats2, alpha_weight, alpha_bias, mask2)

    jax.block_until_ready((out_masked, out_nomask, out2))

    ref_masked = _reference(att_feats, alpha_weight, alpha_bias, att_masks)
    ref_nomask = _reference(att_feats, alpha_weight, alpha_bias, None)
    ref2 = _reference(feats2, alpha_weight, alpha_bias, mask2)

    assert out_masked.shape == (B, D) and out_nomask.shape == (B, D)
    assert out2.shape == (B2, D)
    # Tolerance covers the MXU's f32 matmul decomposition at default precision.
    assert jnp.allclose(out_masked, ref_masked, rtol=2e-3, atol=2e-3)
    assert jnp.allclose(out_nomask, ref_nomask, rtol=2e-3, atol=2e-3)
    assert jnp.allclose(out2, ref2, rtol=2e-3, atol=2e-3)

    print("KERNEL_OK")
</pallas_src>

<mosaic_0001>
module attributes {stable_mosaic.version = 11 : i64} {
  func.func @_attention_kernel_masked(%arg0: i32, %arg1: memref<2x8x32xf32, #tpu.memory_space<vmem>>, %arg2: memref<2x8xf32, #tpu.memory_space<vmem>>, %arg3: memref<1x32xf32, #tpu.memory_space<vmem>>, %arg4: memref<2x32xf32, #tpu.memory_space<vmem>>) attributes {dimension_semantics = [#tpu.dimension_semantics<parallel>], iteration_bounds = array<i64: 1>, scalar_prefetch = 0 : i64, scratch_operands = 0 : i64, tpu.core_type = #tpu.core_type<tc>, window_params = [{transform_indices = @transform_0, window_bounds = array<i64: 2, 8, 32>}, {transform_indices = @transform_1, window_bounds = array<i64: 2, 8>}, {pipeline_mode = #tpu.pipeline_mode<synchronous>, transform_indices = @transform_2, window_bounds = array<i64: 1, 32>}, {transform_indices = @transform_3, window_bounds = array<i64: 2, 32>}]} {
    %c0 = arith.constant 0 : index
    %c0_0 = arith.constant 0 : index
    %0 = vector.load %arg2[%c0, %c0_0] : memref<2x8xf32, #tpu.memory_space<vmem>>, vector<2x8xf32>
    %c0_1 = arith.constant 0 : index
    %c0_2 = arith.constant 0 : index
    %c0_3 = arith.constant 0 : index
    %1 = vector.load %arg1[%c0_1, %c0_2, %c0_3] : memref<2x8x32xf32, #tpu.memory_space<vmem>>, vector<2x8x32xf32>
    %c0_4 = arith.constant 0 : index
    %c0_5 = arith.constant 0 : index
    %2 = vector.load %arg3[%c0_4, %c0_5] : memref<1x32xf32, #tpu.memory_space<vmem>>, vector<1x32xf32>
    %3 = math.tanh %1 : vector<2x8x32xf32>
    %4 = vector.shape_cast %2 : vector<1x32xf32> to vector<1x1x32xf32>
    %5 = vector.broadcast %4 : vector<1x1x32xf32> to vector<2x8x32xf32>
    %6 = arith.mulf %3, %5 : vector<2x8x32xf32>
    %cst = arith.constant dense<0.000000e+00> : vector<2x8xf32>
    %7 = vector.multi_reduction <add>, %6, %cst [2] : vector<2x8x32xf32> to vector<2x8xf32>
    %cst_6 = arith.constant dense<0xFF800000> : vector<2xf32>
    %8 = vector.multi_reduction <maximumf>, %7, %cst_6 [1] : vector<2x8xf32> to vector<2xf32>
    %9 = vector.shape_cast %8 : vector<2xf32> to vector<2x1xf32>
    %10 = vector.broadcast %9 : vector<2x1xf32> to vector<2x8xf32>
    %11 = arith.subf %7, %10 : vector<2x8xf32>
    %12 = math.exp %11 : vector<2x8xf32>
    %13 = arith.mulf %12, %0 : vector<2x8xf32>
    %cst_7 = arith.constant dense<0.000000e+00> : vector<2xf32>
    %14 = vector.multi_reduction <add>, %13, %cst_7 [1] : vector<2x8xf32> to vector<2xf32>
    %15 = vector.shape_cast %14 : vector<2xf32> to vector<2x1xf32>
    %16 = vector.broadcast %15 : vector<2x1xf32> to vector<2x8xf32>
    %17 = arith.divf %13, %16 : vector<2x8xf32>
    %18 = vector.shape_cast %17 : vector<2x8xf32> to vector<2x1x8xf32>
    "tpu.trace_start"() <{level = 10 : i32, message = "bqs,bsd->bqd"}> : () -> ()
    %cst_8 = arith.constant dense<0.000000e+00> : vector<2x1x32xf32>
    %19 = tpu.matmul %18, %1, %cst_8 {dimension_numbers = #tpu.dot_dimension_numbers<[2], [1], [1], [2], [0, 0, 0, 1, 1, 2], [0], [0]>} : vector<2x1x8xf32>, vector<2x8x32xf32>, vector<2x1x32xf32> -> vector<2x1x32xf32>
    "tpu.trace_stop"() : () -> ()
    %20 = vector.shape_cast %19 : vector<2x1x32xf32> to vector<2x32xf32>
    %c0_9 = arith.constant 0 : index
    %c0_10 = arith.constant 0 : index
    %21 = vector.load %arg4[%c0_9, %c0_10] : memref<2x32xf32, #tpu.memory_space<vmem>>, vector<2x32xf32>
    tpu.vector_store %arg4[%c0_9, %c0_10], %20 {strides = array<i32>} : memref<2x32xf32, #tpu.memory_space<vmem>>, vector<2x32xf32>,
    return
  }
  func.func @transform_0(%arg0: i32) -> (i32, i32, i32) {
    %c0_i32 = arith.constant 0 : i32
    %c0_i32_0 = arith.constant 0 : i32
    %c0_i32_1 = arith.constant 0 : i32
    return %arg0, %c0_i32, %c0_i32_0 : i32, i32, i32
  }
  func.func @transform_1(%arg0: i32) -> (i32, i32) {
    %c0_i32 = arith.constant 0 : i32
    %c0_i32_0 = arith.constant 0 : i32
    return %arg0, %c0_i32 : i32, i32
  }
  func.func @transform_2(%arg0: i32) -> (i32, i32) {
    %c0_i32 = arith.constant 0 : i32
    %c0_i32_0 = arith.constant 0 : i32
    %c0_i32_1 = arith.constant 0 : i32
    return %c0_i32, %c0_i32_0 : i32, i32
  }
  func.func @transform_3(%arg0: i32) -> (i32, i32) {
    %c0_i32 = arith.constant 0 : i32
    %c0_i32_0 = arith.constant 0 : i32
    return %arg0, %c0_i32 : i32, i32
  }
}

</mosaic_0001>

<bundles_post_ra>
// kernel: tpu_custom_call.1
= control target key start
LH: loop header
LB: loop body
LE: loop exit
PB: predicated region body
PF: predicated region fallthrough
CT: control target
= control target key end

     0   :  { %8 = vsyncpa [#allocation3], 0  ;;  %s503_s0 = inlined_call_operand.hbm [shape: f32[2,8,32], index: 0, kind: input, shape index: {}]   ;;  %s504_s1 = inlined_call_operand.hbm [shape: f32[2,8], index: 1, kind: input, shape index: {}]   ;;  %s505_s2 = inlined_call_operand.vmem [shape: f32[1,32], index: 2, kind: input, shape index: {}]   ;;  %s506_s3 = inlined_call_operand.hbm [shape: f32[2,32], index: 3, kind: output, shape index: {}]  }
   0x1   :  { %9 = vsyncpa [#allocation6], 0 }
   0x2   :  { %10 = vsyncpa [#allocation4], 0  ;;  %s442_s12 = smov [#allocation2]  }
   0x3   :  { %s16_s13 = sshll.u32 %s442_s12, 4  ;;  %s17_s13 = int_to_ptr.vmem [resolvable:$true] %s16_s13 }
   0x4   :  { %s384_s14 = scalar_lea.vmem %s17_s13, 256  ;;  %p389_p1 = scmp.lt.s32.totalorder %s17_s13, %s17_s13 }
   0x5   :  { %p385_p0 = scmp.ne.s32.totalorder %s17_s13, %s384_s14  ;;  %p390_p2 = scmp.lt.s32.totalorder %s384_s14, %s384_s14 }
   0x7   :  { %p391_p3 = por %p390_p2, %p389_p1 }
   0x9   :  { %p392_p4 = pnand %p391_p3, %p385_p0 }
   0xb   :  { %395 = shalt.err (!%p392_p4)
}
   0xc   :  { %s443_s15 = smov 128   ;;  %s444_s16 = smov 8  }
   0xd   :  { %22 = dma.hbm_to_vmem [thread:$0]  %s503_s0, 256, %s17_s13, [#allocation3], %s443_s15, %s443_s15, %s444_s16  }
   0xe   :  { %s445_s19 = smov [#allocation5]  }
   0xf   :  { %s29_s20 = sshll.u32 %s445_s19, 4  ;;  %s30_s20 = int_to_ptr.vmem [resolvable:$true] %s29_s20 }
  0x10   :  { %s404_s21 = scalar_lea.vmem %s30_s20, 32  ;;  %p409_p6 = scmp.lt.s32.totalorder %s30_s20, %s30_s20 }
  0x11   :  { %p405_p5 = scmp.ne.s32.totalorder %s30_s20, %s404_s21  ;;  %p410_p7 = scmp.lt.s32.totalorder %s404_s21, %s404_s21 }
  0x13   :  { %p411_p8 = por %p410_p7, %p409_p6 }
  0x15   :  { %p412_p9 = pnand %p411_p8, %p405_p5 }
  0x17   :  { %415 = shalt.err (!%p412_p9)
}
  0x18   :  { %32 = dma.hbm_to_vmem [thread:$0]  %s504_s1, 32, %s30_s20, [#allocation6]  }
  0x19   :  { %436 = dma.done.wait [#allocation3], 256  }
  0x1a   :  { %437 = vsyncadd [#allocation3], 4294967040 }
  0x1b   :  { %438 = dma.done.wait [#allocation6], 32  }
  0x1c   :  { %439 = vsyncadd [#allocation6], 4294967264  ;;  %v64_v0 = vlaneseq  ;;  %v478_v4 = vld [vmem:[#allocation2] sm:$0xff]  ;;  %v480_v5 = vld [vmem:[#allocation2 + $0x8] sm:$0xff]  ;;  %vm55_vm0 = vcmask 261120   ;;  %vm74_vm1 = vcmask 1041409  }
  0x1d   :  { %364 = vtanh.f32 %v478_v4  ;;  %v337_v6 = vld [vmem:[%s505_s2] ss:$0 sm:$0xff]  ;;  %v41_v14 = vld [vmem:[#allocation5] sm:$0x3]  ;;  %vm77_vm2 = vcmask 58368   ;;  %v446_v24 = vmov 0  }
  0x1e   :  { %v65_v1 = vand.u32 127, %v64_v0  ;;  %v67_v2 = vshrl.u32 %v64_v0, 7  ;;  %366 = vtanh.f32 %v480_v5  ;;  %362 = vset.pattern.permute.xlu1 %v446_v24  ;;  %363 = vset.pattern.permute.xlu0 %v446_v24  ;;  %v447_v47 = vmov 0.0   ;;  %s449_s1 = smov [#allocation7]  }
  0x1f   :  { %349 = vmatprep.subr.mxu1 %v447_v47  ;;  %344 = vmatprep.subr.mxu0 %v447_v47  ;;  %vm448_vm3 = vmmov 0   ;;  %vm161_vm4 = vcmask 64512   ;;  %s327_s2 = sshll.u32 %s449_s1, 4  ;;  %vm319_vm5 = vcmask 254976   ;;  %s328_s2 = int_to_ptr.vmem [resolvable:$true] %s327_s2 }
  0x20   :  { %v476_v3 = vsub.s32 %v65_v1, %v67_v2  ;;  %v88_v13 = vsub.s32 1, %v67_v2  ;;  %v84_v22 = vsub.s32 0, %v67_v2  ;;  %350 = vmatpush3.msra.mxu1 %v480_v5  ;;  %351 = vmatprep.mubr.msk.f32.mxu1 %vm448_vm3, %v447_v47  ;;  %s416_s25 = scalar_lea.vmem %s328_s2, 32  ;;  %p421_p11 = scmp.lt.s32.totalorder %s328_s2, %s328_s2 }
  0x21   :  { %345 = vmatpush3.msra.mxu0 %v478_v4  ;;  %346 = vmatprep.mubr.msk.f32.mxu0 %vm448_vm3, %v447_v47  ;;  %p417_p10 = scmp.ne.s32.totalorder %s328_s2, %s416_s25  ;;  %p422_p12 = scmp.lt.s32.totalorder %s416_s25, %s416_s25 }
  0x22   :  { %v109_v15 = vrot.slane %v41_v14, %v88_v13  ;;  %v102_v23 = vrot.slane %v41_v14, %v84_v22 }
  0x23   :  { %p423_p13 = por %p422_p12, %p421_p11 }
  0x25   :  { %p424_p0 = pnand %p423_p13, %p417_p10 }
  0x2a   :  { %v365_v7 = vpop.eup %364 }
  0x2b   :  { %v367_v8 = vpop.eup %366  ;;  %v53_v9 = vmul.f32 %v365_v7, %v337_v6 }
  0x2c   :  { %v54_v10 = vmul.f32 %v367_v8, %v337_v6 }
  0x2d   :  { %v56_v11 = vsel %vm55_vm0, %v53_v9, 0.0 }
  0x2e   :  { %57 = vadd.xlane.f32.xlu0 %v56_v11  ;;  %v59_v12 = vsel %vm55_vm0, %v54_v10, 0.0 }
  0x32   :  { %60 = vadd.xlane.f32.xlu0 %v59_v12 }
  0x48   :  { %111 = vbcast.lane.b32.xlu0 %v109_v15, 256 }
  0xb7   :  { %v58_v16 = vpop.xlane.xlu0 %57 }
  0xb8   :  { %v69_v18 = vrot.slane %v58_v16, %v476_v3 }
  0xbb   :  { %v61_v17 = vpop.xlane.xlu0 %60 }
  0xbc   :  { %v73_v19 = vrot.slane %v61_v17, %v476_v3 }
  0xbe   :  { %v75_v20 = vsel %vm74_vm1, %v73_v19, %v69_v18 }
  0xbf   :  { %v78_v21 = vsel %vm77_vm2, %v75_v20, -inf  ;;  %v112_v36 = vpop.permute.xlu0 %111 }
  0xc0   :  { %79 = vmax.xlane.f32.xlu1 %v78_v21 }
  0xd1   :  { %104 = vbcast.lane.b32.xlu1 %v102_v23, 256 }
 0x149   :  { %v80_v25 = vpop.xlane.xlu1 %79 }
 0x14a   :  { %v85_v26 = vrot.slane %v80_v25, %v84_v22  ;;  %v89_v27 = vrot.slane %v80_v25, %v88_v13 }
 0x14c   :  { %v92_v28 = vsub.f32 %v58_v16, %v85_v26  ;;  %v93_v29 = vsub.f32 %v61_v17, %v89_v27 }
 0x14d   :  { %v105_v32 = vpop.permute.xlu1 %104 }
 0x14e   :  { %v94_v30 = vmul.f32 1.442695, %v92_v28  ;;  %v96_v31 = vmul.f32 1.442695, %v93_v29 }
 0x150   :  { %368 = vpow2.f32 %v94_v30 }
 0x151   :  { %370 = vpow2.f32 %v96_v31 }
 0x15d   :  { %v369_v33 = vpop.eup %368 }
 0x15e   :  { %v115_v34 = vmul.f32 %v369_v33, %v105_v32  ;;  %v371_v35 = vpop.eup %370 }
 0x15f   :  { %v116_v37 = vmul.f32 %v371_v35, %v112_v36 }
 0x160   :  { %120 = vperm.xlu1 %362, %v115_v34  }
 0x164   :  { %123 = vperm.xlu1 %362, %v116_v37  }
 0x1db   :  { %v121_v38 = vpop.permute.xlu1 %120 }
 0x1dc   :  { %v128_v40 = vrot.slane %v121_v38, %v476_v3 }
 0x1df   :  { %v124_v39 = vpop.permute.xlu1 %123 }
 0x1e0   :  { %v132_v41 = vrot.slane %v124_v39, %v476_v3 }
 0x1e2   :  { %v133_v42 = vsel %vm74_vm1, %v132_v41, %v128_v40 }
 0x1e3   :  { %v135_v43 = vsel %vm77_vm2, %v133_v42, 0.0 }
 0x1e4   :  { %136 = vadd.xlane.f32.xlu1 %v135_v43 }
 0x26d   :  { %v137_v44 = vpop.xlane.xlu1 %136 }
 0x26e   :  { %v146_v45 = vrot.slane %v137_v44, %v88_v13  ;;  %v142_v46 = vrot.slane %v137_v44, %v84_v22 }
 0x270   :  { %372 = vrcp.f32 %v146_v45 }
 0x271   :  { %374 = vrcp.f32 %v142_v46 }
 0x27d   :  { %v373_v48 = vpop.eup %372 }
 0x27e   :  { %v152_v49 = vmul.f32 %v373_v48, %v116_v37  ;;  %v375_v50 = vpop.eup %374 }
 0x27f   :  { %v150_v51 = vmul.f32 %v375_v50, %v115_v34 }
 0x280   :  { %236 = vperm.xlu0 %363, %v152_v49  }
 0x284   :  { %155 = vperm.xlu0 %363, %v150_v51  }
 0x2fb   :  { %v237_v52 = vpop.permute.xlu0 %236 }
 0x2fc   :  { %v241_v53 = vrot.slane %v237_v52, %v476_v3 }
 0x2fe   :  { %352 = vmatmul.mubr.msk.f32.vlgmr.msra.gmra.mxu1 %vm161_vm4, %v241_v53 }
 0x2ff   :  { %v156_v54 = vpop.permute.xlu0 %155 }
 0x300   :  { %v160_v55 = vrot.slane %v156_v54, %v476_v3 }
 0x302   :  { %347 = vmatmul.mubr.msk.f32.vlgmr.msra.gmra.mxu0 %vm161_vm4, %v160_v55 }
 0x3be   :  { %v310_v56 = vpop.f32.mrf.mxu1 }
 0x3bf   :  { %v316_v58 = vrot.slane %v310_v56, 7 }
 0x3c0   :  { %v353_v57 = vpop.f32.mrf.mxu1 }
 0x3c2   :  { %v230_v59 = vpop.f32.mrf.mxu0 }
 0x3c3   :  { %v317_v60 = vsel %vm74_vm1, %v316_v58, %v230_v59 }
 0x3c4   :  { %v348_v61 = vpop.f32.mrf.mxu0  ;;  %320 = vst.msk [vmem:[#allocation7] sm:$0x3] %vm319_vm5, %v317_v60 }
 0x3c5   :  { %427 = shalt.err (!%p424_p0)
}
 0x3c6   :  { %330 = dma.vmem_to_hbm [thread:$0]  %s328_s2, 32, %s506_s3, [#allocation4]  }
 0x3c7   :  { %440 = dma.done.wait [#allocation4], 32  }
 0x3c8   :  { %441 = vsyncadd [#allocation4], 4294967264 }
 0x3c9   :  { %334 = vsyncpa [#allocation3], 1 }
 0x3ca   :  { %335 = vsyncpa [#allocation6], 1 }
 0x3cb   :  { %336 = vsyncpa [#allocation4], 1 }

</bundles_post_ra>
